<compile_context>
chip_gen: v7x
topology: tpu7x:2x2x1
jax: 0.10.0
libtpu: 0.0.40
codegen_flags: <defaults>
</compile_context>

<pallas_src>
import jax
import jax.numpy as jnp
import numpy as np
from typing import NamedTuple
from jax.experimental import pallas as pl
from jax.experimental.pallas import tpu as pltpu


def _ceil_to(x, m):
    return ((x + m - 1) // m) * m


def _pick_tile(total, unit, cap):
    """Largest multiple of `unit` that divides `total` and is <= cap."""
    m = total // unit
    for d in range(min(m, max(1, cap // unit)), 0, -1):
        if m % d == 0:
            return unit * d
    return unit


class Plan(NamedTuple):
    Nd_p: int        # padded dst-node count
    Ns_p: int        # padded src-node count
    Fin_p: int       # padded input feature dim
    H_p: int         # padded hidden dim
    tnd: int         # dst tile
    tns: int         # Ns (contraction) tile for the aggregation kernel
    tns_xw: int      # Ns tile for the XW precompute kernel
    vmem_limit: int  # per-generation vmem_limit_bytes


def make_plan(n_src, n_dst, fin, hidden):
    """Pick padding/tiling per TPU generation (re-derived for 64 MiB v7x VMEM)."""
    vmem_phys = 64 * 1024 * 1024                      # conservative fallback (v7x-sized)
    try:
        info = pltpu.get_tpu_info()
        v = int(getattr(info, "vmem_capacity_bytes", 0) or 0)
        if v > 0:
            vmem_phys = v
    except Exception:
        pass
    small_vmem = vmem_phys <= 64 * 1024 * 1024
    if small_vmem:                                    # v7x: 64 MiB VMEM, 2 TCs
        vmem_limit = 40 * 1024 * 1024
        tnd_cap, tns_cap = 256, 1024
    else:                                             # v5e / v6e: 128 MiB VMEM
        vmem_limit = 96 * 1024 * 1024
        tnd_cap, tns_cap = 512, 2048

    Fin_p = _ceil_to(fin, 128)
    H_p = _ceil_to(hidden, 128)
    Ns_p = _ceil_to(n_src, 128)

    if n_dst <= tnd_cap:
        Nd_p = _ceil_to(n_dst, 16)
        tnd = Nd_p
        if small_vmem and Nd_p >= 16:
            tnd = Nd_p // 2                           # >=2 dst tiles so both v7x TCs work
    else:
        Nd_p = _ceil_to(n_dst, tnd_cap)
        tnd = tnd_cap

    tns = _pick_tile(Ns_p, 128, tns_cap)
    # Keep the XW kernel's double-buffered x block modest for large Fin.
    xw_cap = max(128, min(tns_cap, (4 * 1024 * 1024) // (2 * Fin_p) // 128 * 128))
    tns_xw = _pick_tile(Ns_p, 128, xw_cap)
    return Plan(Nd_p, Ns_p, Fin_p, H_p, tnd, tns, tns_xw, vmem_limit)


def preprocess_graph(adj, plan):
    """One-time static graph preprocessing.

    adj: [R, Ns, Nd] 0/1 edges (src -> dst) per relation.
    Returns A_hat: [R, Nd_p, Ns_p] bfloat16 with
        A_hat[r, d, s] = d_dst[r,d]^-1/2 * adj[r, s, d] * d_src[r,s]^-1/2
    (DGL GraphConv norm='both', degrees clamped at 1), zero-padded to the plan.
    """
    R, Ns, Nd = adj.shape
    src_norm = jnp.maximum(adj.sum(axis=2), 1.0) ** -0.5          # [R, Ns]
    dst_norm = jnp.maximum(adj.sum(axis=1), 1.0) ** -0.5          # [R, Nd]
    a_hat = (dst_norm[:, :, None]
             * jnp.transpose(adj, (0, 2, 1))
             * src_norm[:, None, :])                              # [R, Nd, Ns]
    a_hat = jnp.pad(a_hat, ((0, 0), (0, plan.Nd_p - Nd), (0, plan.Ns_p - Ns)))
    # TODO(synk): on v7x an fp8 (e4m3) A_hat would halve HBM/VMEM again; keep
    # bf16 until accuracy is re-validated on real (high-degree) graphs.
    return a_hat.astype(jnp.bfloat16)


def xw_kernel(x_ref, w_ref, xw_ref):
    """XW_r tile = x_r tile @ W_r  (bf16 x bf16 MXU, f32 accumulate)."""
    xw_ref[...] = jnp.dot(x_ref[...], w_ref[...],
                          preferred_element_type=jnp.float32).astype(xw_ref.dtype)


def precompute_params(x_src, w, b, plan):
    """One-time (for static features/weights) parameter preprocessing:
    XW_r = x_r @ W_r as bf16 [R, Ns_p, H_p], plus the pre-summed padded bias."""
    R, Ns, Fin = x_src.shape
    H = w.shape[-1]
    x_p = jnp.pad(x_src, ((0, 0), (0, plan.Ns_p - Ns),
                          (0, plan.Fin_p - Fin))).astype(jnp.bfloat16)
    w_p = jnp.pad(w, ((0, 0), (0, plan.Fin_p - Fin),
                      (0, plan.H_p - H))).astype(jnp.bfloat16)

    tns = plan.tns_xw
    xw = pl.pallas_call(
        xw_kernel,
        out_shape=jax.ShapeDtypeStruct((R, plan.Ns_p, plan.H_p), jnp.bfloat16),
        grid_spec=pltpu.PrefetchScalarGridSpec(
            num_scalar_prefetch=0,
            grid=(R, plan.Ns_p // tns),
            in_specs=[
                pl.BlockSpec((None, tns, plan.Fin_p), lambda r, s: (r, s, 0)),      # x_r tile
                pl.BlockSpec((None, plan.Fin_p, plan.H_p), lambda r, s: (r, 0, 0)),  # W_r
            ],
            out_specs=pl.BlockSpec((None, tns, plan.H_p), lambda r, s: (r, s, 0)),
        ),
        compiler_params=pltpu.CompilerParams(
            dimension_semantics=("parallel", "parallel"),
            vmem_limit_bytes=plan.vmem_limit,
        ),
    )(x_p, w_p)

    b_sum = jnp.pad(b.sum(axis=0), (0, plan.H_p - H))[None, :].astype(jnp.float32)
    return xw, b_sum


def hetero_gcn_kernel(a_ref, xw_ref, bsum_ref, alpha_ref, out_ref):
    """Grid = (dst tiles [parallel], relations [arbitrary], Ns tiles [arbitrary]).

    Per step: accumulate A_hat_r[dst_tile, ns_tile] @ XW_r[ns_tile] (bf16 MXU,
    f32 acc) directly into the resident output block; on the last reduction
    step add the pre-summed bias and apply PReLU in place.
    """
    r = pl.program_id(1)
    s = pl.program_id(2)

    h = jnp.dot(a_ref[...], xw_ref[...], preferred_element_type=jnp.float32)

    is_first = jnp.logical_and(r == 0, s == 0)

    @pl.when(is_first)
    def _():
        out_ref[...] = h

    @pl.when(jnp.logical_not(is_first))
    def _():
        out_ref[...] = out_ref[...] + h

    is_last = jnp.logical_and(r == pl.num_programs(1) - 1,
                              s == pl.num_programs(2) - 1)

    @pl.when(is_last)
    def _():
        acc = out_ref[...] + bsum_ref[...]          # sum_r b_r, added exactly once
        alpha = alpha_ref[0]
        out_ref[...] = jnp.where(acc > 0, acc, alpha * acc)


def node_embedding_forward(a_hat, xw, b_sum, alpha, plan, n_dst, hidden):
    """a_hat: [R, Nd_p, Ns_p] bf16  pre-normalized transposed adjacency
       xw:    [R, Ns_p, H_p]  bf16  precomputed x_r @ W_r
       b_sum: [1, H_p]        f32   sum_r b_r (padded)
       alpha: [1]             f32   PReLU weight
       returns [n_dst, hidden] f32."""
    R = a_hat.shape[0]
    out = pl.pallas_call(
        hetero_gcn_kernel,
        out_shape=jax.ShapeDtypeStruct((plan.Nd_p, plan.H_p), jnp.float32),
        grid_spec=pltpu.PrefetchScalarGridSpec(
            num_scalar_prefetch=0,
            grid=(plan.Nd_p // plan.tnd, R, plan.Ns_p // plan.tns),
            in_specs=[
                pl.BlockSpec((None, plan.tnd, plan.tns),
                             lambda i, r, s: (r, i, s)),                 # A_hat tile
                pl.BlockSpec((None, plan.tns, plan.H_p),
                             lambda i, r, s: (r, s, 0)),                 # XW tile
                pl.BlockSpec((1, plan.H_p), lambda i, r, s: (0, 0)),     # b_sum (resident)
                pl.BlockSpec(memory_space=pltpu.MemorySpace.SMEM),       # alpha
            ],
            out_specs=pl.BlockSpec((plan.tnd, plan.H_p), lambda i, r, s: (i, 0)),
        ),
        compiler_params=pltpu.CompilerParams(
            dimension_semantics=("parallel", "arbitrary", "arbitrary"),
            vmem_limit_bytes=plan.vmem_limit,
        ),
    )(a_hat, xw, b_sum, alpha)
    return out[:n_dst, :hidden]


def reference(adj, x_src, w, b, alpha):
    """Pure-JAX f32 reference of the same forward pass (module semantics)."""
    R, Ns, Nd = adj.shape
    H = w.shape[-1]
    out = jnp.zeros((Nd, H), jnp.float32)
    for r in range(R):
        A = adj[r]
        sn = jnp.maximum(A.sum(axis=1), 1.0) ** -0.5
        dn = jnp.maximum(A.sum(axis=0), 1.0) ** -0.5
        h = (A.T @ (x_src[r] * sn[:, None])) @ w[r]
        h = h * dn[:, None] + b[r][None, :]
        out = out + h
    return jnp.where(out > 0, out, alpha * out)


if __name__ == "__main__":
    # Small synthetic hetero graph: 3 relations sharing one dst node type.
    # TODO(synk): DGL allows different node counts / feature dims per relation;
    # here all relations are padded to a common (Ns, Fin) stacked layout.
    R, Ns, Nd, Fin, H = 3, 8, 8, 16, 32

    key = jax.random.PRNGKey(0)
    k_adj, k_x, k_w, k_b = jax.random.split(key, 4)

    adj = jax.random.bernoulli(k_adj, 0.4, (R, Ns, Nd)).astype(jnp.float32)
    x_src = jax.random.normal(k_x, (R, Ns, Fin), jnp.float32)

    # GraphConv weights: xavier_normal_ (std = sqrt(2 / (fan_in + fan_out))).
    xav_std = float(np.sqrt(2.0 / (Fin + H)))
    w = jax.random.normal(k_w, (R, Fin, H), jnp.float32) * xav_std
    # GraphConv bias init is zeros; use a small random bias here purely to
    # exercise the pre-summed-bias epilogue path (forward is parameter-agnostic).
    b = 0.1 * jax.random.normal(k_b, (R, H), jnp.float32)
    alpha = jnp.full((1,), 0.25, jnp.float32)     # PReLU default weight

    plan = make_plan(Ns, Nd, Fin, H)
    a_hat = preprocess_graph(adj, plan)           # one-time: norms folded, bf16, padded
    xw, b_sum = precompute_params(x_src, w, b, plan)  # one-time: XW_r (Pallas), sum_r b_r
    out = node_embedding_forward(a_hat, xw, b_sum, alpha, plan, Nd, H)
    out = jax.block_until_ready(out)

    ref = reference(adj, x_src, w, b, 0.25)
    # bf16 adjacency/features/weights => compare against f32 module semantics
    # with bf16-appropriate tolerance.
    np.testing.assert_allclose(np.asarray(out), np.asarray(ref), rtol=2e-2, atol=3e-2)

    print("KERNEL_OK")
</pallas_src>

<mosaic_0001>
module attributes {stable_mosaic.version = 11 : i64} {
  func.func @xw_kernel(%arg0: i32, %arg1: i32, %arg2: memref<1x128x128xbf16, #tpu.memory_space<vmem>>, %arg3: memref<1x128x128xbf16, #tpu.memory_space<vmem>>, %arg4: memref<1x128x128xbf16, #tpu.memory_space<vmem>>) attributes {dimension_semantics = [#tpu.dimension_semantics<parallel>, #tpu.dimension_semantics<parallel>], iteration_bounds = array<i64: 3, 1>, scalar_prefetch = 0 : i64, scratch_operands = 0 : i64, tpu.core_type = #tpu.core_type<tc>, window_params = [{transform_indices = @transform_0, window_bounds = array<i64: 1, 128, 128>}, {transform_indices = @transform_1, window_bounds = array<i64: 1, 128, 128>}, {transform_indices = @transform_2, window_bounds = array<i64: 1, 128, 128>}]} {
    %c0 = arith.constant 0 : index
    %c0_0 = arith.constant 0 : index
    %c0_1 = arith.constant 0 : index
    %0 = vector.load %arg2[%c0, %c0_0, %c0_1] : memref<1x128x128xbf16, #tpu.memory_space<vmem>>, vector<1x128x128xbf16>
    %1 = vector.shape_cast %0 : vector<1x128x128xbf16> to vector<128x128xbf16>
    %c0_2 = arith.constant 0 : index
    %c0_3 = arith.constant 0 : index
    %c0_4 = arith.constant 0 : index
    %2 = vector.load %arg3[%c0_2, %c0_3, %c0_4] : memref<1x128x128xbf16, #tpu.memory_space<vmem>>, vector<1x128x128xbf16>
    %3 = vector.shape_cast %2 : vector<1x128x128xbf16> to vector<128x128xbf16>
    %cst = arith.constant dense<0.000000e+00> : vector<128x128xf32>
    %4 = tpu.matmul %1, %3, %cst {dimension_numbers = #tpu.dot_dimension_numbers<[1], [0], [0], [1], [0, 0, 1, 1], [], []>} : vector<128x128xbf16>, vector<128x128xbf16>, vector<128x128xf32> -> vector<128x128xf32>
    %5 = arith.truncf %4 : vector<128x128xf32> to vector<128x128xbf16>
    %c0_5 = arith.constant 0 : index
    %c0_6 = arith.constant 0 : index
    %c0_7 = arith.constant 0 : index
    %6 = vector.load %arg4[%c0_5, %c0_6, %c0_7] : memref<1x128x128xbf16, #tpu.memory_space<vmem>>, vector<1x128x128xbf16>
    %7 = vector.shape_cast %6 : vector<1x128x128xbf16> to vector<128x128xbf16>
    %8 = vector.shape_cast %5 : vector<128x128xbf16> to vector<1x128x128xbf16>
    tpu.vector_store %arg4[%c0_5, %c0_6, %c0_7], %8 {strides = array<i32>} : memref<1x128x128xbf16, #tpu.memory_space<vmem>>, vector<1x128x128xbf16>,
    return
  }
  func.func @transform_0(%arg0: i32, %arg1: i32) -> (i32, i32, i32) {
    %c0_i32 = arith.constant 0 : i32
    %c0_i32_0 = arith.constant 0 : i32
    return %arg0, %arg1, %c0_i32 : i32, i32, i32
  }
  func.func @transform_1(%arg0: i32, %arg1: i32) -> (i32, i32, i32) {
    %c0_i32 = arith.constant 0 : i32
    %c0_i32_0 = arith.constant 0 : i32
    %c0_i32_1 = arith.constant 0 : i32
    return %arg0, %c0_i32, %c0_i32_0 : i32, i32, i32
  }
  func.func @transform_2(%arg0: i32, %arg1: i32) -> (i32, i32, i32) {
    %c0_i32 = arith.constant 0 : i32
    %c0_i32_0 = arith.constant 0 : i32
    return %arg0, %arg1, %c0_i32 : i32, i32, i32
  }
}

</mosaic_0001>

<bundles_post_ra>
// kernel: tpu_custom_call.1
= control target key start
LH: loop header
LB: loop body
LE: loop exit
PB: predicated region body
PF: predicated region fallthrough
CT: control target
= control target key end

     0   :  { %7 = vsyncpa [#allocation3], 0  ;;  %s1351_s0 = inlined_call_operand.hbm [shape: bf16[3,128,128], index: 0, kind: input, shape index: {}]   ;;  %s1352_s1 = inlined_call_operand.hbm [shape: bf16[3,128,128], index: 1, kind: input, shape index: {}]   ;;  %s1353_s2 = inlined_call_operand.hbm [shape: bf16[3,128,128], index: 2, kind: output, shape index: {}]  }
   0x1   :  { %9 = vsyncpa [#allocation3 + $0x1], 0 }
   0x2   :  { %10 = vsyncpa [#allocation6], 0 }
   0x3   :  { %12 = vsyncpa [#allocation6 + $0x1], 0 }
   0x4   :  { %13 = vsyncpa [#allocation4], 0 }
   0x5   :  { %15 = vsyncpa [#allocation4 + $0x1], 0  ;;  %s1092_s9 = smov 0   ;;  %s1094_s10 = smov 0  }
   0x6   :  { %s1096_s11 = smov 0   ;;  %s1098_s12 = smov 0  }
   0x7   :  { %s1100_s13 = smov 0   ;;  %s1102_s14 = smov 0  }
   0x8 LB: > { %s654_s15 = sadd.s32 4294967295, %s1068_s14   ;;  %s655_s16 = sadd.s32 4294967294, %s1068_s14   ;;  %s1068_s14 = sphi %s1102_s14, %s21_s14   ;;  %s1064_s13 = sphi %s1100_s13, %s1370_s13   ;;  %s1060_s12 = sphi %s1098_s12, %s1369_s12   ;;  %s1056_s11 = sphi %s1096_s11, %s1368_s11   ;;  %s1052_s10 = sphi %s1094_s10, %s1367_s10   ;;  %s1048_s9 = sphi %s1092_s9, %s1366_s9  }
   0x9   : > { %s33_s17 = sadd.s32 1, %s1064_s13  ;;  %s42_s18 = sadd.s32 1, %s1056_s11 }
   0xa   : > { %p35_p0 = scmp.ge.s32.totalorder %s33_s17, 3  ;;  %p49_p1 = scmp.ne.s32.totalorder %s1056_s11, %s1052_s10 }
   0xb   : > { %p50_p2 = scmp.eq.s32.totalorder %s1068_s14, 0  ;;  %p55_p3 = scmp.ne.s32.totalorder %s1052_s10, %s1048_s9 }
   0xc   : > { %s1372_s17 = smov (%p35_p0, %s33_s17), 0  ;;  %p56_p5 = scmp.eq.s32.totalorder %s654_s15, 0 }
   0xd   : > { %p1133_p4 = por %p50_p2, %p49_p1  ;;  %s37_s20 = ssub.s32 %s1064_s13, %s1372_s17 }
   0xe   : > { %p107_p6 = scmp.eq.s32.totalorder %s654_s15, 2  ;;  %p40_p7 = scmp.eq.s32.totalorder %s37_s20, 0 }
   0xf   : > { %p1139_p8 = por %p56_p5, %p55_p3  ;;  %p113_p10 = scmp.eq.s32.totalorder %s655_s16, 2 }
  0x10   : > { %p1143_p9 = por %p107_p6, %p49_p1  ;;  %p852_p12 = scmp.lt.s32.totalorder %s1068_s14, 3 }
  0x11   : > { %s1357_s21 = scalar_select %p1139_p8, 1, 0 }
  0x12   : > { %s1358_s22 = scalar_select %p1143_p9, 1, 0 }
  0x13   : > { %s1148_s23 = scalar_select %p40_p7, %s1056_s11, %s42_s18  }
  0x14   : > { %p1150_p11 = por %p113_p10, %p55_p3  ;;  %s1156_s25 = sand.u32 1, %s1056_s11  }
  0x15   : > { %s658_s26 = sshll.u32 %s1156_s25, 6  ;;  %s705_s27 = sshll.u32 %s1064_s13, 10 }
  0x16   : > { %s1359_s24 = scalar_select %p1150_p11, 1, 0 }
  0x17   : > { %s1165_s30 = scalar_lea.hbm %s1351_s0, %s705_s27  ;;  %s137_s3 = scalar_lea.vmem [#allocation2], %s658_s26 }
  0x18   : > { %s146_s4 = sshll.u32 %s137_s3, 4  ;;  %p1173_p13 = pnand %p852_p12, %p1133_p4  ;;  %s1169_s4 = int_to_ptr.vmem [resolvable:$true] %s146_s4 }
  0x19   : > { %s134_s6 = scalar_lea.sflag [#allocation3], %s1156_s25  ;;  %s922_s7 = scalar_lea.hbm %s1165_s30, 1024 }
  0x1a   : > { %p923_p1 = scmp.ne.s32.totalorder %s1165_s30, %s922_s7  ;;  %p924_p2 = pneg %p1173_p13 }
  0x1b   : > { %s927_s16 = scalar_lea.hbm %s1351_s0, 3072  ;;  %p928_p4 = scmp.lt.u32.totalorder %s1165_s30, %s1351_s0 }
  0x1c   : > { %p925_p3 = pnand %p924_p2, %p923_p1  ;;  %p929_p6 = scmp.lt.u32.totalorder %s927_s16, %s922_s7 }
  0x1d   : > { %p931_p10 = scmp.lt.u32.totalorder %s922_s7, %s1165_s30 }
  0x1e   : > { %p926_p5 = pneg %p925_p3  ;;  %p930_p7 = por %p929_p6, %p928_p4 }
  0x20   : > { %p932_p12 = por %p931_p10, %p930_p7 }
  0x22   : > { %p933_p0 = pnand %p932_p12, %p926_p5 }
  0x24   : > { %936 = shalt.err (!%p933_p0)
}
  0x25   : > { %s937_s20 = scalar_lea.vmem %s1169_s4, 1024  ;;  %s1070_s28 = smov [#allocation2]  }
  0x26   : > { %p938_p1 = scmp.ne.s32.totalorder %s1169_s4, %s937_s20  ;;  %s942_s29 = sshll.u32 %s1070_s28, 4  ;;  %s943_s29 = int_to_ptr.vmem [resolvable:$false] %s942_s29 }
  0x27   : > { %s944_s3 = scalar_lea.vmem %s943_s29, 2048  ;;  %p945_p9 = scmp.lt.s32.totalorder %s1169_s4, %s943_s29 }
  0x28   : > { %p940_p3 = pnand %p938_p1, %p924_p2  ;;  %p946_p4 = scmp.lt.s32.totalorder %s944_s3, %s937_s20 }
  0x2a   : > { %p941_p11 = pneg %p940_p3  ;;  %p947_p6 = por %p946_p4, %p945_p9 }
  0x2c   : > { %p948_p7 = pnand %p947_p6, %p941_p11 }
  0x2e   : > { %951 = shalt.err (!%p948_p7)
}
  0x2f   : > { %s1071_s7 = smov 64   ;;  %s1072_s8 = smov 4  }
  0x30   : > { %844 = dma.hbm_to_vmem [thread:$0]  (!%p1173_p13), %s1165_s30, 1024, %s1169_s4, %s134_s6, %s1071_s7, %s1071_s7, %s1072_s8  }
  0x31   : > { %p175_p9 = scmp.lt.s32.totalorder %s1068_s14, 4  ;;  %s1215_s18 = scalar_lea.hbm %s1352_s1, %s705_s27 }
  0x32   : > { %p1361_p11 = scmp.ge.s32.totalorder %s1068_s14, 1  ;;  %s160_s20 = scalar_lea.vmem [#allocation5], %s658_s26 }
  0x33   : > { %s167_s28 = sshll.u32 %s160_s20, 4  ;;  %s157_s30 = scalar_lea.sflag [#allocation6], %s1156_s25  ;;  %s1225_s28 = int_to_ptr.vmem [resolvable:$true] %s167_s28 }
  0x34   : > { %p1219_p0 = pnand %p1361_p11, %p175_p9  ;;  %s952_s4 = scalar_lea.hbm %s1215_s18, 1024 }
  0x35   : > { %p953_p5 = scmp.ne.s32.totalorder %s1215_s18, %s952_s4  ;;  %s957_s29 = scalar_lea.hbm %s1352_s1, 3072 }
  0x36   : > { %p958_p1 = scmp.lt.u32.totalorder %s1215_s18, %s1352_s1  ;;  %p959_p3 = scmp.lt.u32.totalorder %s957_s29, %s952_s4 }
  0x37   : > { %p955_p10 = pnand %p953_p5, %p924_p2  ;;  %p961_p6 = scmp.lt.u32.totalorder %s952_s4, %s1215_s18 }
  0x38   : > { %p960_p4 = por %p959_p3, %p958_p1 }
  0x39   : > { %p956_p12 = pneg %p955_p10 }
  0x3a   : > { %p962_p7 = por %p961_p6, %p960_p4 }
  0x3c   : > { %p963_p9 = pnand %p962_p7, %p956_p12 }
  0x3e   : > { %966 = shalt.err (!%p963_p9)
}
  0x3f   : > { %s967_s26 = scalar_lea.vmem %s1225_s28, 1024  ;;  %s1073_s16 = smov [#allocation5]  }
  0x40   : > { %p968_p11 = scmp.ne.s32.totalorder %s1225_s28, %s967_s26  ;;  %s972_s20 = sshll.u32 %s1073_s16, 4  ;;  %s973_s20 = int_to_ptr.vmem [resolvable:$false] %s972_s20 }
  0x41   : > { %s974_s27 = scalar_lea.vmem %s973_s20, 2048  ;;  %p975_p8 = scmp.lt.s32.totalorder %s1225_s28, %s973_s20 }
  0x42   : > { %p970_p5 = pnand %p968_p11, %p924_p2  ;;  %p976_p1 = scmp.lt.s32.totalorder %s974_s27, %s967_s26 }
  0x44   : > { %p971_p10 = pneg %p970_p5  ;;  %p977_p3 = por %p976_p1, %p975_p8 }
  0x46   : > { %p978_p4 = pnand %p977_p3, %p971_p10 }
  0x48   : > { %981 = shalt.err (!%p978_p4)
}
  0x49   : > { %847 = dma.hbm_to_vmem [thread:$0]  (!%p1173_p13), %s1215_s18, 1024, %s1225_s28, %s157_s30, %s1071_s7, %s1071_s7, %s1072_s8  }
  0x4a   : > { %179 = sbr.rel (%p1219_p0) target bundleno = 357 (0x165), region = 28  ;;  %s1259_s4 = sand.u32 (!%p1219_p0), 1, %s1052_s10  }
  0x4b   : > { %s1262_s6 = sshll.u32 (!%p1219_p0), %s1259_s4, 6  ;;  %s182_s5 = scalar_lea.sflag (!%p1219_p0), [#allocation3], %s1259_s4 }
  0x4c   : > { %s1266_s29 = scalar_lea.vmem (!%p1219_p0), [#allocation2], %s1262_s6  ;;  %p1363_p8 = scmp.ne.s32.totalorder (!%p1219_p0), %s1357_s21, 0 }
  0x51   : > { %1035 = dma.done.wait (%p1363_p8), %s182_s5, 1024  }
  0x52   : > { %1037 = vsyncadd (%p1363_p8), %s182_s5, 4294966272  ;;  %s191_s25 = scalar_lea.sflag [#allocation6], %s1259_s4  ;;  %s1274_s7 = scalar_lea.vmem [#allocation5], %s1262_s6 }
  0x53   : > { %1039 = dma.done.wait (%p1363_p8), %s191_s25, 1024  }
  0x54   : > { %1041 = vsyncadd (%p1363_p8), %s191_s25, 4294966272  ;;  %v906_v0 = vld [vmem:[%s1274_s7] sm:$0xff]   ;;  %v907_v1 = vld [vmem:[%s1274_s7 + $0x8] sm:$0xff]   ;;  %s219_s21 = scalar_lea.vmem [#allocation7], %s1262_s6  ;;  %s723_s18 = sshll.u32 %s1060_s12, 10 }
  0x55   : > { %787 = vmatprep.subr.bf16.mxu0 %v906_v0  ;;  %819 = vmatprep.subr.bf16.mxu1 %v906_v0  ;;  %v908_v2 = vld [vmem:[%s1274_s7 + $0x10] sm:$0xff]   ;;  %v909_v3 = vld [vmem:[%s1274_s7 + $0x18] sm:$0xff]   ;;  %v914_v4 = vld [vmem:[%s1266_s29] sm:$0xff]   ;;  %s544_s8 = sshll.u32 %s219_s21, 4  ;;  %s1303_s30 = scalar_lea.hbm %s1353_s2, %s723_s18  ;;  %s1298_s8 = int_to_ptr.vmem [resolvable:$true] %s544_s8 }
  0x56   : > { %788 = vmatpush3.bf16.msra.mxu0 %v906_v0  ;;  %827 = vmatpush3.bf16.msra.mxu1 %v906_v0  ;;  %v915_v5 = vld [vmem:[%s1266_s29 + $0x20] sm:$0xff]   ;;  %v911_v7 = vld [vmem:[%s1274_s7 + $0x28] sm:$0xff]   ;;  %v912_v8 = vld [vmem:[%s1274_s7 + $0x30] sm:$0xff]   ;;  %s529_s12 = scalar_lea.sflag [#allocation4], %s1259_s4  ;;  %s982_s3 = scalar_lea.vmem %s1298_s8, 1024 }
  0x57   : > { %789 = vmatprep.subr.bf16.mxu0 %v907_v1  ;;  %820 = vmatprep.subr.bf16.mxu1 %v907_v1  ;;  %v910_v6 = vld [vmem:[%s1274_s7 + $0x20] sm:$0xff]   ;;  %v913_v9 = vld [vmem:[%s1274_s7 + $0x38] sm:$0xff]   ;;  %v916_v10 = vld [vmem:[%s1266_s29 + $0x8] sm:$0xff]   ;;  %p983_p13 = scmp.ne.s32.totalorder %s1298_s8, %s982_s3  ;;  %p1364_p2 = scmp.ne.s32.totalorder %s1358_s22, 0 }
  0x58   : > { %803 = vmatprep.mubr.bf16.mxu0 %v914_v4  ;;  %811 = vmatprep.mubr.bf16.mxu1 %v915_v5  ;;  %v917_v11 = vld [vmem:[%s1266_s29 + $0x28] sm:$0xff]   ;;  %v918_v12 = vld [vmem:[%s1266_s29 + $0x10] sm:$0xff]   ;;  %v920_v14 = vld [vmem:[%s1266_s29 + $0x18] sm:$0xff]   ;;  %s1074_s15 = smov [#allocation7]  }
  0x59   : > { %v919_v13 = vld [vmem:[%s1266_s29 + $0x30] sm:$0xff]   ;;  %v921_v15 = vld [vmem:[%s1266_s29 + $0x38] sm:$0xff]   ;;  %p984_p0 = pnand %p983_p13, %p1364_p2  ;;  %s986_s26 = sshll.u32 %s1074_s15, 4  ;;  %s987_s26 = int_to_ptr.vmem [resolvable:$false] %s986_s26 }
  0x5a   : > { %790 = vmatpush3.bf16.msra.mxu0 %v907_v1  ;;  %828 = vmatpush3.bf16.msra.mxu1 %v907_v1  ;;  %s988_s16 = scalar_lea.vmem %s987_s26, 2048  ;;  %p989_p6 = scmp.lt.s32.totalorder %s1298_s8, %s987_s26 }
  0x5b   : > { %791 = vmatprep.subr.bf16.mxu0 %v908_v2  ;;  %821 = vmatprep.subr.bf16.mxu1 %v908_v2  ;;  %p985_p12 = pneg %p984_p0  ;;  %p990_p7 = scmp.lt.s32.totalorder %s988_s16, %s982_s3 }
  0x5d   : > { %p991_p9 = por %p990_p7, %p989_p6 }
  0x5e   : > { %792 = vmatpush3.bf16.msra.mxu0 %v908_v2  ;;  %829 = vmatpush3.bf16.msra.mxu1 %v908_v2 }
  0x5f   : > { %793 = vmatprep.subr.bf16.mxu0 %v909_v3  ;;  %822 = vmatprep.subr.bf16.mxu1 %v909_v3  ;;  %p992_p11 = pnand %p991_p9, %p985_p12 }
  0x62   : > { %794 = vmatpush3.bf16.msra.mxu0 %v909_v3  ;;  %830 = vmatpush3.bf16.msra.mxu1 %v909_v3 }
  0x63   : > { %795 = vmatprep.subr.bf16.mxu0 %v910_v6  ;;  %823 = vmatprep.subr.bf16.mxu1 %v910_v6 }
  0x66   : > { %796 = vmatpush3.bf16.msra.mxu0 %v910_v6  ;;  %831 = vmatpush3.bf16.msra.mxu1 %v910_v6 }
  0x67   : > { %797 = vmatprep.subr.bf16.mxu0 %v911_v7  ;;  %824 = vmatprep.subr.bf16.mxu1 %v911_v7 }
  0x6a   : > { %798 = vmatpush3.bf16.msra.mxu0 %v911_v7  ;;  %832 = vmatpush3.bf16.msra.mxu1 %v911_v7 }
  0x6b   : > { %799 = vmatprep.subr.bf16.mxu0 %v912_v8  ;;  %825 = vmatprep.subr.bf16.mxu1 %v912_v8 }
  0x6e   : > { %800 = vmatpush3.bf16.msra.mxu0 %v912_v8  ;;  %833 = vmatpush3.bf16.msra.mxu1 %v912_v8 }
  0x6f   : > { %801 = vmatprep.subr.bf16.mxu0 %v913_v9  ;;  %826 = vmatprep.subr.bf16.mxu1 %v913_v9 }
  0x72   : > { %802 = vmatpush3.bf16.msra.mxu0 %v913_v9  ;;  %834 = vmatpush3.bf16.msra.mxu1 %v913_v9 }
  0x75   : > { %804 = vmatmul.mubr.bf16.vlgmr.msra.gmra.mrb[0].mxu0 %v916_v10  ;;  %812 = vmatmul.mubr.bf16.vlgmr.msra.gmra.mrb[0].mxu1 %v917_v11 }
  0x76   : > { %807 = vmatprep.mubr.bf16.mxu0 %v918_v12  ;;  %815 = vmatprep.mubr.bf16.mxu1 %v919_v13 }
  0x7d   : > { %808 = vmatmul.mubr.bf16.gmra.mrb[4].mxu0 %v920_v14  ;;  %816 = vmatmul.mubr.bf16.gmra.mrb[4].mxu1 %v921_v15 }
 0x148   : > { %v805_v16 = vpop.f32.mrb[0].mxu0  ;;  %v813_v17 = vpop.f32.mrb[0].mxu1 }
 0x149   : > { %v385_v18 = vpop.f32.mrb[1].mxu0  ;;  %v417_v19 = vpop.f32.mrb[1].mxu1 }
 0x14a   : > { %v806_v20 = vpop.f32.mrb[2].mxu0  ;;  %v814_v21 = vpop.f32.mrb[2].mxu1 }
 0x14b   : > { %v732_v22 = vpack.c.bf16 %v806_v20, %v805_v16  ;;  %v752_v23 = vpack.c.bf16 %v814_v21, %v813_v17  ;;  %v388_v24 = vpop.f32.mrb[3].mxu0  ;;  %v420_v25 = vpop.f32.mrb[3].mxu1 }
 0x14c   : > { %v727_v26 = vpack.c.bf16 %v388_v24, %v385_v18  ;;  %v747_v27 = vpack.c.bf16 %v420_v25, %v417_v19 }
 0x14d   : > { %764 = vst [vmem:[%s219_s21 + $0x8] sm:$0xff] %v732_v22   ;;  %768 = vst [vmem:[%s219_s21 + $0x28] sm:$0xff] %v752_v23  }
 0x14e   : > { %728 = vst [vmem:[%s219_s21] sm:$0xff] %v727_v26   ;;  %767 = vst [vmem:[%s219_s21 + $0x20] sm:$0xff] %v747_v27  }
 0x150   : > { %v809_v28 = vpop.f32.mrb[4].mxu0  ;;  %v817_v29 = vpop.f32.mrb[4].mxu1 }
 0x151   : > { %v401_v30 = vpop.f32.mrb[5].mxu0  ;;  %v433_v31 = vpop.f32.mrb[5].mxu1 }
 0x152   : > { %v810_v32 = vpop.f32.mrb[6].mxu0  ;;  %v818_v33 = vpop.f32.mrb[6].mxu1 }
 0x153   : > { %v742_v34 = vpack.c.bf16 %v810_v32, %v809_v28  ;;  %v762_v35 = vpack.c.bf16 %v818_v33, %v817_v29  ;;  %v404_v36 = vpop.f32.mrb[7].mxu0  ;;  %v436_v37 = vpop.f32.mrb[7].mxu1 }
 0x154   : > { %v737_v38 = vpack.c.bf16 %v404_v36, %v401_v30  ;;  %v757_v39 = vpack.c.bf16 %v436_v37, %v433_v31 }
 0x155   : > { %766 = vst [vmem:[%s219_s21 + $0x18] sm:$0xff] %v742_v34   ;;  %770 = vst [vmem:[%s219_s21 + $0x38] sm:$0xff] %v762_v35  }
 0x156   : > { %765 = vst [vmem:[%s219_s21 + $0x10] sm:$0xff] %v737_v38   ;;  %769 = vst [vmem:[%s219_s21 + $0x30] sm:$0xff] %v757_v39  }
 0x157   : > { %995 = shalt.err (!%p992_p11)
}
 0x158   : > { %s996_s20 = scalar_lea.hbm %s1303_s30, 1024  ;;  %s1000_s5 = scalar_lea.hbm %s1353_s2, 3072 }
 0x159   : > { %p997_p5 = scmp.ne.s32.totalorder %s1303_s30, %s996_s20  ;;  %p1001_p3 = scmp.lt.u32.totalorder %s1303_s30, %s1353_s2 }
 0x15a   : > { %p1002_p4 = scmp.lt.u32.totalorder %s1000_s5, %s996_s20  ;;  %p1004_p13 = scmp.lt.u32.totalorder %s996_s20, %s1303_s30 }
 0x15b   : > { %p998_p10 = pnand %p997_p5, %p1364_p2 }
 0x15c   : > { %p1003_p8 = por %p1002_p4, %p1001_p3 }
 0x15d   : > { %p999_p1 = pneg %p998_p10 }
 0x15e   : > { %p1005_p0 = por %p1004_p13, %p1003_p8 }
 0x160   : > { %p1006_p12 = pnand %p1005_p0, %p999_p1 }
 0x162   : > { %1009 = shalt.err (!%p1006_p12)
}
 0x163   : > { %s1075_s7 = smov 64   ;;  %s1076_s21 = smov 4  }
 0x164   : > { %839 = dma.vmem_to_hbm [thread:$0]  (%p1364_p2), %s1298_s8, 1024, %s1303_s30, %s529_s12, %s1075_s7, %s1075_s7, %s1076_s21  }
 0x165 PF: > { %p853_p6 = scmp.ge.s32.totalorder %s1068_s14, 2  ;;  %s559_s18 = sand.u32 1, %s1048_s9  }
 0x166   : > { %p1365_p7 = scmp.ne.s32.totalorder %s1359_s24, 0  ;;  %s560_s19 = scalar_lea.sflag [#allocation4], %s559_s18 }
 0x168   : > { %p849_p9 = pnand %p853_p6, %p1365_p7 }
 0x16a   : > { %1043 = dma.done.wait (!%p849_p9), %s560_s19, 1024  }
 0x16b   : > { %1045 = vsyncadd (!%p849_p9), %s560_s19, 4294966272  ;;  %s21_s14 = sadd.s32 1, %s1068_s14   ;;  %s1366_s9 = smov %s1052_s10 }
 0x16c   : > { %p18_p11 = scmp.ge.s32.totalorder %s21_s14, 5   ;;  %s1367_s10 = smov %s1056_s11 }
 0x16d   : > { %s1368_s11 = smov %s1148_s23  ;;  %s1369_s12 = smov %s1064_s13 }
 0x16e   : > { %s1370_s13 = smov %s1372_s17  ;;  %20 = sbr.rel (!%p18_p11) target bundleno = 8 (0x8), region = 86 }
 0x175   :  { %565 = vsyncpa [#allocation3], 1 }
 0x176   :  { %567 = vsyncpa [#allocation3 + $0x1], 1 }
 0x177   :  { %568 = vsyncpa [#allocation6], 1 }
 0x178   :  { %570 = vsyncpa [#allocation6 + $0x1], 1 }
 0x179   :  { %571 = vsyncpa [#allocation4], 1 }
 0x17a   :  { %573 = vsyncpa [#allocation4 + $0x1], 1 }

</bundles_post_ra>
